<compile_context>
chip_gen: v7x
topology: tpu7x:2x2x1
jax: 0.10.0
libtpu: 0.0.40
codegen_flags: <defaults>
</compile_context>

<pallas_src>
import functools

import jax
import jax.numpy as jnp
from jax.experimental import pallas as pl
from jax.experimental.pallas import tpu as pltpu


def _round_up(x, m):
    return (x + m - 1) // m * m


_ATTN_ROW_CHUNK = 16      # rows processed per VPU/XLU chunk inside the attn kernel


@functools.lru_cache(maxsize=None)
def _vmem_limit_bytes():
    """Generation-aware VMEM budget: ~3/4 of physical, capped at ~96 MiB."""
    try:
        cap = int(pltpu.get_tpu_info().vmem_capacity_bytes)
    except Exception:
        cap = 64 * 1024 * 1024          # conservative (v7x-sized) fallback
    return int(min(cap * 3 // 4, 100 * 1024 * 1024))


@functools.lru_cache(maxsize=None)
def _single_buffer_supported():
    """Probe once whether pipeline_mode=pl.Buffered(1) lowers + runs correctly."""
    def _probe_kernel(x_ref, w_ref, o_ref):
        o_ref[...] = x_ref[...] + w_ref[...]

    try:
        w_spec = pl.BlockSpec((8, 128), lambda i: (0, 0),
                              pipeline_mode=pl.Buffered(1))
        out = pl.pallas_call(
            _probe_kernel,
            out_shape=jax.ShapeDtypeStruct((16, 128), jnp.float32),
            grid_spec=pltpu.PrefetchScalarGridSpec(
                num_scalar_prefetch=0,
                grid=(2,),
                in_specs=[pl.BlockSpec((8, 128), lambda i: (i, 0)), w_spec],
                out_specs=pl.BlockSpec((8, 128), lambda i: (i, 0))),
        )(jnp.zeros((16, 128), jnp.float32), jnp.ones((8, 128), jnp.float32))
        return bool(jnp.allclose(out, 1.0))
    except Exception:
        return False


def _weight_buffer_factor():
    return 1 if _single_buffer_supported() else 2


def _weight_spec(shape):
    """BlockSpec for a grid-invariant (weight) operand; single-buffered if possible."""
    index_map = lambda *grid_idx: (0,) * len(shape)
    if _single_buffer_supported():
        return pl.BlockSpec(shape, index_map, pipeline_mode=pl.Buffered(1))
    return pl.BlockSpec(shape, index_map)


# ----------------------------------------------------------------------------
# Tiled matmul + bias:  Y = X @ W + b
# Used for the hoisted LSTM input projection (all timesteps at once) so the
# recurrent loop only contains the small (B, H) x (H, 4H) matmul.
# ----------------------------------------------------------------------------
def _matmul_bias_kernel(x_ref, w_ref, b_ref, o_ref):
    o_ref[...] = (jnp.dot(x_ref[...], w_ref[...],
                          preferred_element_type=jnp.float32)
                  + b_ref[...]).astype(o_ref.dtype)


def matmul_bias(x, w, b, *, tile_m=None):
    """x: (N, K), w: (K, M), b: (1, M) -> (N, M) float32.

    The full-K weight stays VMEM-resident (single-buffered when supported);
    rows are tiled over a "parallel" grid axis.
    """
    N, K = x.shape
    _, M = w.shape

    if tile_m is None:
        limit = _vmem_limit_bytes()
        w_bytes = K * M * 4 * _weight_buffer_factor()
        # TODO(synk): if even the single-buffered weight exceeds the budget
        # (K*M*4 ~ limit), add a K grid axis + f32 accumulator scratch.
        budget = max(limit - w_bytes - (8 << 20), 4 << 20)
        per_row = 2 * (K + M) * 4            # double-buffered x row + out row
        tile_m = max(8, min(256, budget // per_row // 8 * 8))
    tile_m = min(tile_m, _round_up(N, 8))

    n_pad = _round_up(N, tile_m)
    if n_pad != N:
        x = jnp.pad(x, ((0, n_pad - N), (0, 0)))

    out = pl.pallas_call(
        _matmul_bias_kernel,
        out_shape=jax.ShapeDtypeStruct((n_pad, M), jnp.float32),
        grid_spec=pltpu.PrefetchScalarGridSpec(
            num_scalar_prefetch=0,
            grid=(n_pad // tile_m,),
            in_specs=[pl.BlockSpec((tile_m, K), lambda i: (i, 0)),
                      _weight_spec((K, M)),
                      _weight_spec((1, M))],
            out_specs=pl.BlockSpec((tile_m, M), lambda i: (i, 0)),
        ),
        compiler_params=pltpu.CompilerParams(
            dimension_semantics=("parallel",),
            vmem_limit_bytes=_vmem_limit_bytes()),
    )(x, w, b)
    return out[:N]


# ----------------------------------------------------------------------------
# LSTM recurrence over precomputed input gates (time-major blocks).
# Gate order matches torch.nn.LSTM: [i, f, g, o].
# Grid: (batch_split ["parallel"], time tiles ["arbitrary"]).  h/c live in VMEM
# scratch across time tiles and are carried in registers within a tile.
# ----------------------------------------------------------------------------
def _lstm_rec_kernel(ih_ref, whh_ref, out_ref, h_scr, c_scr, *, hidden, tile_l):
    @pl.when(pl.program_id(1) == 0)
    def _():
        h_scr[...] = jnp.zeros_like(h_scr)
        c_scr[...] = jnp.zeros_like(c_scr)

    H = hidden
    whh = whh_ref[...]
    # Carry h/c as loop-locals over the fully unrolled time tile; persist to
    # VMEM scratch only once at tile exit.
    h = h_scr[...]
    c = c_scr[...]
    for t in range(tile_l):
        gates = ih_ref[t] + jnp.dot(h, whh, preferred_element_type=jnp.float32)
        i_g = jax.nn.sigmoid(gates[:, 0 * H:1 * H])
        f_g = jax.nn.sigmoid(gates[:, 1 * H:2 * H])
        g_g = jnp.tanh(gates[:, 2 * H:3 * H])
        o_g = jax.nn.sigmoid(gates[:, 3 * H:4 * H])
        c = f_g * c + i_g * g_g
        h = o_g * jnp.tanh(c)
        out_ref[t] = h.astype(out_ref.dtype)   # dense (b_tile, H) slab store
    h_scr[...] = h
    c_scr[...] = c


def lstm_forward(x, w_ih, w_hh, b, *, tile_l=None):
    """Single-layer unidirectional LSTM (PyTorch semantics, batch_first).

    x: (B, L, D_in) -> (B, L, H).  `b` must equal PyTorch's b_ih + b_hh.
    """
    B, L, D = x.shape
    H = w_hh.shape[0]

    # Hoisted input projection for ALL timesteps: one big MXU matmul, then a
    # single (small) transpose to the time-major layout the recurrence streams.
    ih = matmul_bias(x.reshape(B * L, D), w_ih, b)
    ih = ih.reshape(B, L, 4 * H).transpose(1, 0, 2)            # (L, B, 4H)

    # Optional 2-way batch split: a "parallel" axis v7x's two TensorCores can
    # shard; on 1-TC parts it is just two sequential passes (same total work).
    n_bsplit = 2 if _round_up(B, 8) >= 16 else 1
    b_pad = _round_up(B, 8 * n_bsplit)
    b_tile = b_pad // n_bsplit

    if tile_l is None:
        limit = _vmem_limit_bytes()
        w_bytes = H * 4 * H * 4 * _weight_buffer_factor()
        budget = max(limit - w_bytes - (8 << 20), 4 << 20)
        per_step = 2 * b_tile * (4 * H + H) * 4   # double-buffered ih + out slabs
        tile_l = max(1, min(32, budget // per_step))
    tile_l = max(1, min(tile_l, L))
    l_pad = _round_up(L, tile_l)

    if (l_pad, b_pad) != (L, B):
        # Padding is appended after the real sequence / batch so it never
        # affects real steps; it is sliced away below.
        ih = jnp.pad(ih, ((0, l_pad - L), (0, b_pad - B), (0, 0)))

    kernel = functools.partial(_lstm_rec_kernel, hidden=H, tile_l=tile_l)
    out = pl.pallas_call(
        kernel,
        out_shape=jax.ShapeDtypeStruct((l_pad, b_pad, H), jnp.float32),
        grid_spec=pltpu.PrefetchScalarGridSpec(
            num_scalar_prefetch=0,
            grid=(n_bsplit, l_pad // tile_l),
            in_specs=[pl.BlockSpec((tile_l, b_tile, 4 * H),
                                   lambda s, l: (l, s, 0)),
                      _weight_spec((H, 4 * H))],
            out_specs=pl.BlockSpec((tile_l, b_tile, H), lambda s, l: (l, s, 0)),
            scratch_shapes=[pltpu.VMEM((b_tile, H), jnp.float32),
                            pltpu.VMEM((b_tile, H), jnp.float32)],
        ),
        compiler_params=pltpu.CompilerParams(
            dimension_semantics=("parallel", "arbitrary"),
            vmem_limit_bytes=_vmem_limit_bytes()),
    )(ih, w_hh)
    return out[:L, :B].transpose(1, 0, 2)                      # (B, L, H)


# ----------------------------------------------------------------------------
# SoftDotAttention (no mask, output_tilde=True), tiled over rows N = B*L.
# The attention-probability output is unused by SpeakerEncoder and not emitted.
# Context is streamed in bf16; compute is f32.  The VPU/XLU part runs in row
# chunks so large f32 temporaries never materialize; the three MXU matmuls run
# on the full tile.
# ----------------------------------------------------------------------------
def _attn_kernel(h_ref, ctx_ref, win_ref, wout_ctx_ref, wout_h_ref, ht_ref,
                 wgt_scr, *, row_chunk, exact):
    h = h_ref[...]                                            # (tN, H) f32

    # linear_in for the whole tile: one MXU matmul.
    target = jnp.dot(h, win_ref[...],
                     preferred_element_type=jnp.float32)      # (tN, F)

    tile_n = h_ref.shape[0]
    for r0 in range(0, tile_n, row_chunk):
        r1 = r0 + row_chunk
        ctx_c = ctx_ref[r0:r1, :, :].astype(jnp.float32)      # (rc, V, F)
        t_c = target[r0:r1, :]                                # (rc, F)

        # logits / weighted context as broadcast-multiply + reduce (VPU/XLU)
        # instead of width-1 / depth-V batched MXU matvecs.
        logits = jnp.sum(ctx_c * t_c[:, None, :], axis=-1)    # (rc, V)
        m = jnp.max(logits, axis=-1, keepdims=True)
        e = jnp.exp(logits - m)
        denom = jnp.sum(e, axis=-1, keepdims=True)
        if exact:
            attn = e / denom
        else:
            attn = e * pl.reciprocal(denom, approx=True)      # EUP slot
        wgt_scr[r0:r1, :] = jnp.sum(attn[:, :, None] * ctx_c, axis=1)

    # linear_out(cat(weighted, h)) as the equivalent split matmul, full tile.
    pre = (jnp.dot(wgt_scr[...], wout_ctx_ref[...],
                   preferred_element_type=jnp.float32)
           + jnp.dot(h, wout_h_ref[...],
                     preferred_element_type=jnp.float32))     # (tN, H)
    ht_ref[...] = jnp.tanh(pre).astype(ht_ref.dtype)


def attention_forward(h, context, w_in, w_out_ctx, w_out_h, *, tile_n=None,
                      exact=False):
    """h: (N, H), context: (N, V, F) -> h_tilde (N, H)."""
    N, H = h.shape
    _, V, F = context.shape

    # The kernel is HBM-bound on the context stream at real sizes
    # (B*L x 36 x 2052); stream it in bf16, compute in f32.
    ctx = context.astype(jnp.bfloat16)

    if tile_n is None:
        limit = _vmem_limit_bytes()
        wt_bytes = 4 * (H * F + F * H + H * H) * _weight_buffer_factor()
        # Fixed in-kernel temporaries: ~2 live f32 copies of one row chunk.
        fixed = 2 * _ATTN_ROW_CHUNK * V * F * 4 + (8 << 20)
        budget = max(limit - wt_bytes - fixed, 4 << 20)
        # Per row: double-buffered bf16 ctx + f32 weighted/target + h/out tiles.
        per_row = 2 * V * F * 2 + 2 * F * 4 + 6 * H * 4
        tile_n = max(8, min(256, budget // per_row // 8 * 8))
    tile_n = min(tile_n, _round_up(N, 8))
    row_chunk = min(_ATTN_ROW_CHUNK, tile_n)
    tile_n = max(row_chunk, tile_n // row_chunk * row_chunk)

    n_pad = _round_up(N, tile_n)
    if n_pad != N:
        h = jnp.pad(h, ((0, n_pad - N), (0, 0)))
        ctx = jnp.pad(ctx, ((0, n_pad - N), (0, 0), (0, 0)))

    kernel = functools.partial(_attn_kernel, row_chunk=row_chunk, exact=exact)
    ht = pl.pallas_call(
        kernel,
        out_shape=jax.ShapeDtypeStruct((n_pad, H), jnp.float32),
        grid_spec=pltpu.PrefetchScalarGridSpec(
            num_scalar_prefetch=0,
            grid=(n_pad // tile_n,),
            in_specs=[pl.BlockSpec((tile_n, H), lambda i: (i, 0)),
                      pl.BlockSpec((tile_n, V, F), lambda i: (i, 0, 0)),
                      _weight_spec((H, F)),
                      _weight_spec((F, H)),
                      _weight_spec((H, H))],
            out_specs=pl.BlockSpec((tile_n, H), lambda i: (i, 0)),
            scratch_shapes=[pltpu.VMEM((tile_n, F), jnp.float32)],
        ),
        compiler_params=pltpu.CompilerParams(
            dimension_semantics=("parallel",),
            vmem_limit_bytes=_vmem_limit_bytes()),
    )(h, ctx, w_in, w_out_ctx, w_out_h)
    return ht[:N]


# ----------------------------------------------------------------------------
# SpeakerEncoder forward
# ----------------------------------------------------------------------------
def speaker_encoder_forward(params, action_embeds, feature, lengths=None,
                            already_dropfeat=True):
    """
    action_embeds: (B, L, F)
    feature:       (B, L, V, F)
    returns:       (B, L, H)
    """
    B, L, F = action_embeds.shape
    V = feature.shape[2]
    H = params['w_hh1'].shape[0]

    # drop / drop3 are identity in eval mode; `lengths` is unused (as in torch).
    # TODO(synk): training-mode dropout (drop / drop3 with featdropout) not implemented.
    ctx = lstm_forward(action_embeds,
                       params['w_ih1'], params['w_hh1'], params['b1'])      # (B,L,H)

    h_flat = ctx.reshape(B * L, H)
    ctx_flat = feature.reshape(B * L, V, F)
    x = attention_forward(h_flat, ctx_flat,
                          params['w_in'], params['w_out_ctx'],
                          params['w_out_h'])                                # (B*L,H)
    x = x.reshape(B, L, H)

    x = lstm_forward(x, params['w_ih2'], params['w_hh2'], params['b2'])     # (B,L,H)
    return x


def init_params(key, feature_size, hidden_size):
    ks = jax.random.split(key, 8)
    s = 0.1
    F, H = feature_size, hidden_size
    return {
        # first LSTM (input = feature_size); b = b_ih + b_hh of torch.nn.LSTM
        'w_ih1': s * jax.random.normal(ks[0], (F, 4 * H), jnp.float32),
        'w_hh1': s * jax.random.normal(ks[1], (H, 4 * H), jnp.float32),
        'b1':    s * jax.random.normal(ks[2], (1, 4 * H), jnp.float32),
        # SoftDotAttention(query_dim=H, ctx_dim=F)
        'w_in':      s * jax.random.normal(ks[3], (H, F), jnp.float32),
        'w_out_ctx': s * jax.random.normal(ks[4], (F, H), jnp.float32),
        'w_out_h':   s * jax.random.normal(ks[5], (H, H), jnp.float32),
        # post LSTM (input = hidden_size)
        'w_ih2': s * jax.random.normal(ks[6], (H, 4 * H), jnp.float32),
        'w_hh2': s * jax.random.normal(ks[7], (H, 4 * H), jnp.float32),
        'b2':    jnp.zeros((1, 4 * H), jnp.float32),
    }


# ----------------------------------------------------------------------------
# Pure-JAX reference (f32) for a sanity check.
# ----------------------------------------------------------------------------
def _lstm_ref(x, w_ih, w_hh, b):
    B, L, D = x.shape
    H = w_hh.shape[0]

    def step(carry, x_t):
        h, c = carry
        gates = x_t @ w_ih + b[0] + h @ w_hh
        i = jax.nn.sigmoid(gates[:, :H])
        f = jax.nn.sigmoid(gates[:, H:2 * H])
        g = jnp.tanh(gates[:, 2 * H:3 * H])
        o = jax.nn.sigmoid(gates[:, 3 * H:4 * H])
        c = f * c + i * g
        h = o * jnp.tanh(c)
        return (h, c), h

    h0 = jnp.zeros((B, H), jnp.float32)
    (_, _), hs = jax.lax.scan(step, (h0, h0), jnp.swapaxes(x, 0, 1))
    return jnp.swapaxes(hs, 0, 1)


def _attn_ref(h, ctx, w_in, w_out_ctx, w_out_h):
    target = h @ w_in
    logits = jnp.einsum('nvf,nf->nv', ctx, target)
    attn = jax.nn.softmax(logits, axis=-1)
    weighted = jnp.einsum('nv,nvf->nf', attn, ctx)
    return jnp.tanh(weighted @ w_out_ctx + h @ w_out_h)


def _speaker_encoder_ref(params, action_embeds, feature):
    B, L, F = action_embeds.shape
    H = params['w_hh1'].shape[0]
    ctx = _lstm_ref(action_embeds, params['w_ih1'], params['w_hh1'], params['b1'])
    x = _attn_ref(ctx.reshape(B * L, H), feature.reshape(B * L, -1, F),
                  params['w_in'], params['w_out_ctx'], params['w_out_h'])
    x = x.reshape(B, L, H)
    return _lstm_ref(x, params['w_ih2'], params['w_hh2'], params['b2'])


if __name__ == "__main__":
    B, L, V = 2, 8, 4          # batch, max_length, num views (36 in real model)
    FEATURE_SIZE, HIDDEN_SIZE = 64, 32

    key = jax.random.PRNGKey(0)
    k_p, k_a, k_f = jax.random.split(key, 3)

    params = init_params(k_p, FEATURE_SIZE, HIDDEN_SIZE)
    action_embeds = jax.random.normal(k_a, (B, L, FEATURE_SIZE), jnp.float32)
    feature = jax.random.normal(k_f, (B, L, V, FEATURE_SIZE), jnp.float32)
    lengths = jnp.full((B,), L, jnp.int32)   # not used by forward (as in torch)

    out = speaker_encoder_forward(params, action_embeds, feature, lengths,
                                  already_dropfeat=True)
    out = jax.block_until_ready(out)
    assert out.shape == (B, L, HIDDEN_SIZE)

    # Sanity check against a pure-JAX f32 reference (kernel streams the attention
    # context in bf16 and uses an approximate reciprocal, hence loose tolerance).
    ref = _speaker_encoder_ref(params, action_embeds, feature)
    max_err = float(jnp.max(jnp.abs(out - ref)))
    assert max_err < 5e-2, f"max abs error vs reference: {max_err}"

    print("KERNEL_OK")
</pallas_src>

<mosaic_0001>
module attributes {stable_mosaic.version = 11 : i64} {
  func.func @_probe_kernel(%arg0: i32, %arg1: memref<8x128xf32, #tpu.memory_space<vmem>>, %arg2: memref<8x128xf32, #tpu.memory_space<vmem>>, %arg3: memref<8x128xf32, #tpu.memory_space<vmem>>) attributes {dimension_semantics = [#tpu.dimension_semantics<arbitrary>], iteration_bounds = array<i64: 2>, scalar_prefetch = 0 : i64, scratch_operands = 0 : i64, tpu.core_type = #tpu.core_type<tc>, window_params = [{transform_indices = @transform_0, window_bounds = array<i64: 8, 128>}, {pipeline_mode = #tpu.pipeline_mode<synchronous>, transform_indices = @transform_1, window_bounds = array<i64: 8, 128>}, {transform_indices = @transform_2, window_bounds = array<i64: 8, 128>}]} {
    %c0 = arith.constant 0 : index
    %c0_0 = arith.constant 0 : index
    %0 = vector.load %arg1[%c0, %c0_0] : memref<8x128xf32, #tpu.memory_space<vmem>>, vector<8x128xf32>
    %c0_1 = arith.constant 0 : index
    %c0_2 = arith.constant 0 : index
    %1 = vector.load %arg2[%c0_1, %c0_2] : memref<8x128xf32, #tpu.memory_space<vmem>>, vector<8x128xf32>
    %2 = arith.addf %0, %1 : vector<8x128xf32>
    %c0_3 = arith.constant 0 : index
    %c0_4 = arith.constant 0 : index
    %3 = vector.load %arg3[%c0_3, %c0_4] : memref<8x128xf32, #tpu.memory_space<vmem>>, vector<8x128xf32>
    tpu.vector_store %arg3[%c0_3, %c0_4], %2 {strides = array<i32>} : memref<8x128xf32, #tpu.memory_space<vmem>>, vector<8x128xf32>,
    return
  }
  func.func @transform_0(%arg0: i32) -> (i32, i32) {
    %c0_i32 = arith.constant 0 : i32
    %c0_i32_0 = arith.constant 0 : i32
    return %arg0, %c0_i32 : i32, i32
  }
  func.func @transform_1(%arg0: i32) -> (i32, i32) {
    %c0_i32 = arith.constant 0 : i32
    %c0_i32_0 = arith.constant 0 : i32
    %c0_i32_1 = arith.constant 0 : i32
    return %c0_i32, %c0_i32_0 : i32, i32
  }
  func.func @transform_2(%arg0: i32) -> (i32, i32) {
    %c0_i32 = arith.constant 0 : i32
    %c0_i32_0 = arith.constant 0 : i32
    return %arg0, %c0_i32 : i32, i32
  }
}

module attributes {stable_mosaic.version = 11 : i64} {
  func.func @_matmul_bias_kernel(%arg0: i32, %arg1: memref<16x64xf32, #tpu.memory_space<vmem>>, %arg2: memref<64x128xf32, #tpu.memory_space<vmem>>, %arg3: memref<1x128xf32, #tpu.memory_space<vmem>>, %arg4: memref<16x128xf32, #tpu.memory_space<vmem>>) attributes {dimension_semantics = [#tpu.dimension_semantics<parallel>], iteration_bounds = array<i64: 1>, scalar_prefetch = 0 : i64, scratch_operands = 0 : i64, tpu.core_type = #tpu.core_type<tc>, window_params = [{transform_indices = @transform_0, window_bounds = array<i64: 16, 64>}, {pipeline_mode = #tpu.pipeline_mode<synchronous>, transform_indices = @transform_1, window_bounds = array<i64: 64, 128>}, {pipeline_mode = #tpu.pipeline_mode<synchronous>, transform_indices = @transform_2, window_bounds = array<i64: 1, 128>}, {transform_indices = @transform_3, window_bounds = array<i64: 16, 128>}]} {
    %c0 = arith.constant 0 : index
    %c0_0 = arith.constant 0 : index
    %0 = vector.load %arg1[%c0, %c0_0] : memref<16x64xf32, #tpu.memory_space<vmem>>, vector<16x64xf32>
    %c0_1 = arith.constant 0 : index
    %c0_2 = arith.constant 0 : index
    %1 = vector.load %arg2[%c0_1, %c0_2] : memref<64x128xf32, #tpu.memory_space<vmem>>, vector<64x128xf32>
    %cst = arith.constant dense<0.000000e+00> : vector<16x128xf32>
    %2 = tpu.matmul %0, %1, %cst {dimension_numbers = #tpu.dot_dimension_numbers<[1], [0], [0], [1], [0, 0, 1, 1], [], []>} : vector<16x64xf32>, vector<64x128xf32>, vector<16x128xf32> -> vector<16x128xf32>
    %c0_3 = arith.constant 0 : index
    %c0_4 = arith.constant 0 : index
    %3 = vector.load %arg3[%c0_3, %c0_4] : memref<1x128xf32, #tpu.memory_space<vmem>>, vector<1x128xf32>
    %4 = vector.broadcast %3 : vector<1x128xf32> to vector<16x128xf32>
    %5 = arith.addf %2, %4 : vector<16x128xf32>
    %c0_5 = arith.constant 0 : index
    %c0_6 = arith.constant 0 : index
    %6 = vector.load %arg4[%c0_5, %c0_6] : memref<16x128xf32, #tpu.memory_space<vmem>>, vector<16x128xf32>
    tpu.vector_store %arg4[%c0_5, %c0_6], %5 {strides = array<i32>} : memref<16x128xf32, #tpu.memory_space<vmem>>, vector<16x128xf32>,
    return
  }
  func.func @transform_0(%arg0: i32) -> (i32, i32) {
    %c0_i32 = arith.constant 0 : i32
    %c0_i32_0 = arith.constant 0 : i32
    return %arg0, %c0_i32 : i32, i32
  }
  func.func @transform_1(%arg0: i32) -> (i32, i32) {
    %c0_i32 = arith.constant 0 : i32
    %c0_i32_0 = arith.constant 0 : i32
    %c0_i32_1 = arith.constant 0 : i32
    return %c0_i32, %c0_i32_0 : i32, i32
  }
  func.func @transform_2(%arg0: i32) -> (i32, i32) {
    %c0_i32 = arith.constant 0 : i32
    %c0_i32_0 = arith.constant 0 : i32
    %c0_i32_1 = arith.constant 0 : i32
    return %c0_i32, %c0_i32_0 : i32, i32
  }
  func.func @transform_3(%arg0: i32) -> (i32, i32) {
    %c0_i32 = arith.constant 0 : i32
    %c0_i32_0 = arith.constant 0 : i32
    return %arg0, %c0_i32 : i32, i32
  }
}

</mosaic_0001>

<bundles_post_ra>
// kernel: tpu_custom_call.1
= control target key start
LH: loop header
LB: loop body
LE: loop exit
PB: predicated region body
PF: predicated region fallthrough
CT: control target
= control target key end

     0   :  { %7 = vsyncpa [#allocation3], 0  ;;  %s690_s0 = inlined_call_operand.hbm [shape: f32[16,128], index: 0, kind: input, shape index: {}]   ;;  %s691_s1 = inlined_call_operand.hbm [shape: f32[8,128], index: 1, kind: input, shape index: {}]   ;;  %s692_s2 = inlined_call_operand.hbm [shape: f32[16,128], index: 2, kind: output, shape index: {}]  }
   0x1   :  { %9 = vsyncpa [#allocation3 + $0x1], 0 }
   0x2   :  { %10 = vsyncpa [#allocation6], 0 }
   0x3   :  { %11 = vsyncpa [#allocation4], 0 }
   0x4   :  { %13 = vsyncpa [#allocation4 + $0x1], 0  ;;  %s489_s9 = smov 0   ;;  %s491_s10 = smov 0  }
   0x5   :  { %s493_s11 = smov 0   ;;  %s495_s12 = smov 0  }
   0x6 LB: > { %s510_s13 = sadd.s32 4294967295, %s469_s12   ;;  %s270_s14 = sadd.s32 4294967294, %s469_s12   ;;  %s469_s12 = sphi %s495_s12, %s716_s12   ;;  %s465_s11 = sphi %s493_s11, %s715_s11   ;;  %s461_s10 = sphi %s491_s10, %s714_s10   ;;  %s457_s9 = sphi %s489_s9, %s713_s9  }
   0x7   : > { %p39_p0 = scmp.ne.s32.totalorder %s461_s10, %s457_s9  ;;  %p693_p1 = scmp.eq.s32.totalorder %s510_s13, 0 }
   0x8   : > { %p90_p3 = scmp.eq.s32.totalorder %s270_s14, 1  ;;  %p271_p5 = scmp.ge.s32.totalorder %s469_s12, 1 }
   0x9   : > { %p519_p4 = por %p693_p1, %p39_p0  ;;  %p97_p7 = scmp.lt.s32.totalorder %s469_s12, 3 }
   0xa   : > { %p524_p6 = por %p90_p3, %p39_p0  ;;  %s471_s18 = smov [#allocation5]  }
   0xb   : > { %s696_s15 = scalar_select %p519_p4, 1, 0 }
   0xc   : > { %s697_s16 = scalar_select %p524_p6, 1, 0 }
   0xd   : > { %p529_p8 = pnand %p271_p5, %p97_p7  ;;  %s110_s19 = sshll.u32 %s471_s18, 4  ;;  %s111_s19 = int_to_ptr.vmem [resolvable:$true] %s110_s19 }
   0xe   : > { %s537_s20 = sadd.s32 1, %s469_s12   ;;  %s26_s24 = sadd.s32 1, %s465_s11 }
   0xf   : > { %s698_s17 = scalar_select %p529_p8, 1, 0 }
  0x10   : > { %p292_p10 = pneg %p529_p8  ;;  %s23_s22 = ssub.s32 %s469_s12, %s537_s20 }
  0x11   : > { %p547_p12 = scmp.eq.s32.totalorder %s23_s22, 0  ;;  %s341_s27 = scalar_lea.hbm %s691_s1, 128 }
  0x12   : > { %p541_p11 = pnand %p292_p10, %p693_p1  ;;  %p342_p0 = scmp.ne.s32.totalorder %s691_s1, %s341_s27 }
  0x13   : > { %s700_s23 = scalar_select %p547_p12, 1, 0 }
  0x14   : > { %p343_p3 = pneg %p541_p11  ;;  %p348_p10 = scmp.lt.u32.totalorder %s341_s27, %s691_s1 }
  0x16   : > { %p344_p5 = pnand %p343_p3, %p342_p0 }
  0x18   : > { %p345_p7 = pneg %p344_p5 }
  0x1a   : > { %p350_p9 = pnand %p348_p10, %p345_p7 }
  0x1c   : > { %353 = shalt.err (!%p350_p9)
}
  0x1d   : > { %s354_s4 = scalar_lea.vmem %s111_s19, 128  ;;  %p362_p6 = scmp.lt.s32.totalorder %s111_s19, %s111_s19 }
  0x1e   : > { %p355_p1 = scmp.ne.s32.totalorder %s111_s19, %s354_s4  ;;  %p363_p4 = scmp.lt.s32.totalorder %s354_s4, %s354_s4 }
  0x20   : > { %p357_p2 = pnand %p355_p1, %p343_p3  ;;  %p364_p8 = por %p363_p4, %p362_p6 }
  0x22   : > { %p358_p13 = pneg %p357_p2 }
  0x24   : > { %p365_p12 = pnand %p364_p8, %p358_p13 }
  0x26   : > { %368 = shalt.err (!%p365_p12)
}
  0x27   : > { %295 = dma.hbm_to_vmem [thread:$0]  (!%p541_p11), %s691_s1, 128, %s111_s19, [#allocation6]  }
  0x28   : > { %p701_p1 = scmp.ne.s32.totalorder %s700_s23, 0  ;;  %p34_p2 = scmp.eq.s32.totalorder %s469_s12, 0 }
  0x29   : > { %p702_p4 = scmp.ne.s32.totalorder %s465_s11, %s461_s10  ;;  %p703_p6 = scmp.eq.s32.totalorder %s510_s13, 1 }
  0x2a   : > { %s573_s7 = scalar_select %p701_p1, %s465_s11, %s26_s24  }
  0x2b   : > { %p581_p8 = por %p703_p6, %p702_p4  ;;  %p305_p9 = scmp.lt.s32.totalorder %s469_s12, 2 }
  0x2c   : > { %s121_s14 = sand.u32 1, %s465_s11   ;;  %p705_p12 = pmov %p702_p4 }
  0x2d   : > { %s274_s18 = sshll.u32 %s121_s14, 3  ;;  %s275_s21 = sshll.u32 %s469_s12, 7 }
  0x2e   : > { %p35_p13 = por %p34_p2, %p705_p12  ;;  %s594_s19 = scalar_lea.hbm %s690_s0, %s275_s21 }
  0x2f   : > { %s125_s23 = scalar_lea.vmem [#allocation2], %s274_s18  ;;  %s122_s27 = scalar_lea.sflag [#allocation3], %s121_s14 }
  0x30   : > { %s132_s24 = sshll.u32 %s125_s23, 4  ;;  %p596_p11 = pnand %p305_p9, %p35_p13  ;;  %s600_s24 = int_to_ptr.vmem [resolvable:$true] %s132_s24 }
  0x31   : > { %s369_s28 = scalar_lea.hbm %s594_s19, 128  ;;  %s374_s3 = scalar_lea.hbm %s690_s0, 256 }
  0x32   : > { %p370_p0 = scmp.ne.s32.totalorder %s594_s19, %s369_s28  ;;  %p371_p3 = pneg %p596_p11 }
  0x33   : > { %p375_p10 = scmp.lt.u32.totalorder %s594_s19, %s690_s0  ;;  %p376_p1 = scmp.lt.u32.totalorder %s374_s3, %s369_s28 }
  0x34   : > { %p372_p5 = pnand %p371_p3, %p370_p0  ;;  %p378_p4 = scmp.lt.u32.totalorder %s369_s28, %s594_s19 }
  0x35   : > { %p377_p2 = por %p376_p1, %p375_p10 }
  0x36   : > { %p373_p7 = pneg %p372_p5 }
  0x37   : > { %p379_p6 = por %p378_p4, %p377_p2 }
  0x39   : > { %p380_p9 = pnand %p379_p6, %p373_p7 }
  0x3b   : > { %383 = shalt.err (!%p380_p9)
}
  0x3c   : > { %s384_s6 = scalar_lea.vmem %s600_s24, 128  ;;  %s472_s14 = smov [#allocation2]  }
  0x3d   : > { %p385_p12 = scmp.ne.s32.totalorder %s600_s24, %s384_s6  ;;  %s389_s18 = sshll.u32 %s472_s14, 4  ;;  %s390_s18 = int_to_ptr.vmem [resolvable:$false] %s389_s18 }
  0x3e   : > { %s391_s21 = scalar_lea.vmem %s390_s18, 256  ;;  %p392_p5 = scmp.lt.s32.totalorder %s600_s24, %s390_s18 }
  0x3f   : > { %p387_p13 = pnand %p385_p12, %p371_p3  ;;  %p393_p10 = scmp.lt.s32.totalorder %s391_s21, %s384_s6 }
  0x41   : > { %p388_p0 = pneg %p387_p13  ;;  %p394_p1 = por %p393_p10, %p392_p5 }
  0x43   : > { %p395_p2 = pnand %p394_p1, %p388_p0 }
  0x45   : > { %398 = shalt.err (!%p395_p2)
}
  0x46   : > { %299 = dma.hbm_to_vmem [thread:$0]  (!%p596_p11), %s594_s19, 128, %s600_s24, %s122_s27  }
  0x47   : > { %p707_p7 = scmp.ne.s32.totalorder %s698_s17, 0 }
  0x48   : > { %s630_s22 = sand.u32 (!%p707_p7), 1, %s461_s10   ;;  %p708_p3 = scmp.ne.s32.totalorder (!%p707_p7), %s696_s15, 0 }
  0x49   : > { %141 = sbr.rel (%p707_p7) target bundleno = 109 (0x6d), region = 28  ;;  %s277_s25 = sshll.u32 (!%p707_p7), %s630_s22, 3 }
  0x4a   : > { %s144_s23 = scalar_lea.sflag (!%p707_p7), [#allocation3], %s630_s22  ;;  %s147_s28 = scalar_lea.vmem (!%p707_p7), [#allocation2], %s277_s25 }
  0x50   : > { %444 = dma.done.wait (%p708_p3), %s144_s23, 128  }
  0x51   : > { %446 = vsyncadd (%p708_p3), %s144_s23, 4294967168  ;;  %p709_p4 = scmp.eq.s32.totalorder %s510_s13, 0 }
  0x53   : > { %448 = dma.done.wait (%p709_p4), [#allocation6], 128   ;;  %p710_p11 = pmov %p709_p4 }
  0x54   : > { %s171_s17 = scalar_lea.vmem [#allocation7], %s277_s25  ;;  %s281_s24 = sshll.u32 %s510_s13, 7  ;;  %v172_v0 = vld [vmem:[%s147_s28] sm:$0xff]  ;;  %v173_v1 = vld [vmem:[#allocation5] sm:$0xff] }
  0x55   : > { %450 = vsyncadd (%p710_p11), [#allocation6], 4294967168  ;;  %s190_s19 = sshll.u32 %s171_s17, 4  ;;  %v174_v2 = vadd.f32 %v173_v1, %v172_v0  ;;  %s648_s27 = scalar_lea.hbm %s692_s2, %s281_s24  ;;  %s643_s19 = int_to_ptr.vmem [resolvable:$true] %s190_s19 }
  0x56   : > { %s177_s29 = scalar_lea.sflag [#allocation4], %s630_s22  ;;  %s399_s30 = scalar_lea.vmem %s643_s19, 128 }
  0x57   : > { %175 = vst [vmem:[%s171_s17] sm:$0xff] %v174_v2  ;;  %p400_p6 = scmp.ne.s32.totalorder %s643_s19, %s399_s30  ;;  %s473_s13 = smov [#allocation7]  }
  0x58   : > { %s403_s3 = sshll.u32 %s473_s13, 4  ;;  %s404_s3 = int_to_ptr.vmem [resolvable:$false] %s403_s3 }
  0x59   : > { %p401_p9 = pnand %p400_p6, %p581_p8  ;;  %s405_s4 = scalar_lea.vmem %s404_s3, 256 }
  0x5a   : > { %p406_p13 = scmp.lt.s32.totalorder %s643_s19, %s404_s3  ;;  %p407_p0 = scmp.lt.s32.totalorder %s405_s4, %s399_s30 }
  0x5b   : > { %p402_p12 = pneg %p401_p9 }
  0x5c   : > { %p408_p5 = por %p407_p0, %p406_p13 }
  0x5e   : > { %p409_p10 = pnand %p408_p5, %p402_p12 }
  0x60   : > { %412 = shalt.err (!%p409_p10)
}
  0x61   : > { %s413_s5 = scalar_lea.hbm %s648_s27, 128  ;;  %s417_s18 = scalar_lea.hbm %s692_s2, 256 }
  0x62   : > { %p414_p1 = scmp.ne.s32.totalorder %s648_s27, %s413_s5  ;;  %p418_p3 = scmp.lt.u32.totalorder %s648_s27, %s692_s2 }
  0x63   : > { %p419_p4 = scmp.lt.u32.totalorder %s417_s18, %s413_s5  ;;  %p421_p6 = scmp.lt.u32.totalorder %s413_s5, %s648_s27 }
  0x64   : > { %p415_p2 = pnand %p414_p1, %p581_p8 }
  0x65   : > { %p420_p11 = por %p419_p4, %p418_p3 }
  0x66   : > { %p416_p7 = pneg %p415_p2 }
  0x67   : > { %p422_p9 = por %p421_p6, %p420_p11 }
  0x69   : > { %p423_p12 = pnand %p422_p9, %p416_p7 }
  0x6b   : > { %426 = shalt.err (!%p423_p12)
}
  0x6c   : > { %290 = dma.vmem_to_hbm [thread:$0]  (%p581_p8), %s643_s19, 128, %s648_s27, %s177_s29  }
  0x6d PF: > { %s202_s25 = sand.u32 1, %s457_s9   ;;  %p711_p13 = scmp.ne.s32.totalorder %s697_s16, 0 }
  0x6e   : > { %p712_p0 = scmp.ge.s32.totalorder %s469_s12, 2  ;;  %s203_s23 = scalar_lea.sflag [#allocation4], %s202_s25 }
  0x70   : > { %p301_p5 = pnand %p712_p0, %p711_p13 }
  0x72   : > { %452 = dma.done.wait (!%p301_p5), %s203_s23, 128  }
  0x73   : > { %454 = vsyncadd (!%p301_p5), %s203_s23, 4294967168  ;;  %p16_p10 = scmp.ge.s32.totalorder %s537_s20, 4   ;;  %s713_s9 = smov %s461_s10 }
  0x74   : > { %s714_s10 = smov %s465_s11  ;;  %s715_s11 = smov %s573_s7 }
  0x75   : > { %s716_s12 = smov %s537_s20  ;;  %18 = sbr.rel (!%p16_p10) target bundleno = 6 (0x6), region = 77 }
  0x7c   :  { %208 = vsyncpa [#allocation3], 1 }
  0x7d   :  { %210 = vsyncpa [#allocation3 + $0x1], 1 }
  0x7e   :  { %211 = vsyncpa [#allocation6], 1 }
  0x7f   :  { %212 = vsyncpa [#allocation4], 1 }
  0x80   :  { %214 = vsyncpa [#allocation4 + $0x1], 1 }

// kernel: tpu_custom_call.1
= control target key start
LH: loop header
LB: loop body
LE: loop exit
PB: predicated region body
PF: predicated region fallthrough
CT: control target
= control target key end

     0   :  { %8 = vsyncpa [#allocation3], 0  ;;  %s362_s0 = inlined_call_operand.hbm [shape: f32[16,64], index: 0, kind: input, shape index: {}]   ;;  %s363_s1 = inlined_call_operand.hbm [shape: f32[64,128], index: 1, kind: input, shape index: {}]   ;;  %s364_s2 = inlined_call_operand.vmem [shape: f32[1,128], index: 2, kind: input, shape index: {}]   ;;  %s365_s3 = inlined_call_operand.hbm [shape: f32[16,128], index: 3, kind: output, shape index: {}]  }
   0x1   :  { %9 = vsyncpa [#allocation6], 0 }
   0x2   :  { %10 = vsyncpa [#allocation4], 0  ;;  %s287_s12 = smov [#allocation2]   ;;  %s215_s16 = scalar_lea.hbm %s362_s0, 256 }
   0x3   :  { %s16_s13 = sshll.u32 %s287_s12, 4  ;;  %p216_p0 = scmp.ne.s32.totalorder %s362_s0, %s215_s16  ;;  %s17_s13 = int_to_ptr.vmem [resolvable:$true] %s16_s13 }
   0x4   :  { %p219_p1 = scmp.lt.u32.totalorder %s215_s16, %s362_s0 }
   0x6   :  { %p221_p2 = pnand %p219_p1, %p216_p0 }
   0x8   :  { %224 = shalt.err (!%p221_p2)
}
   0x9   :  { %s225_s21 = scalar_lea.vmem %s17_s13, 256  ;;  %p230_p4 = scmp.lt.s32.totalorder %s17_s13, %s17_s13 }
   0xa   :  { %p226_p3 = scmp.ne.s32.totalorder %s17_s13, %s225_s21  ;;  %p231_p5 = scmp.lt.s32.totalorder %s225_s21, %s225_s21 }
   0xc   :  { %p232_p6 = por %p231_p5, %p230_p4 }
   0xe   :  { %p233_p7 = pnand %p232_p6, %p226_p3 }
  0x10   :  { %236 = shalt.err (!%p233_p7)
}
  0x11   :  { %s288_s22 = smov 128   ;;  %s289_s23 = smov 8  }
  0x12   :  { %22 = dma.hbm_to_vmem [thread:$0]  %s362_s0, 256, %s17_s13, [#allocation3], %s288_s22, %s288_s22, %s289_s23  }
  0x13   :  { %s290_s26 = smov [#allocation5]   ;;  %s237_s30 = scalar_lea.hbm %s363_s1, 1024 }
  0x14   :  { %s28_s27 = sshll.u32 %s290_s26, 4  ;;  %p238_p8 = scmp.ne.s32.totalorder %s363_s1, %s237_s30  ;;  %s29_s27 = int_to_ptr.vmem [resolvable:$true] %s28_s27 }
  0x15   :  { %p241_p9 = scmp.lt.u32.totalorder %s237_s30, %s363_s1 }
  0x17   :  { %p243_p10 = pnand %p241_p9, %p238_p8 }
  0x19   :  { %246 = shalt.err (!%p243_p10)
}
  0x1a   :  { %s247_s8 = scalar_lea.vmem %s29_s27, 1024  ;;  %p252_p12 = scmp.lt.s32.totalorder %s29_s27, %s29_s27 }
  0x1b   :  { %p248_p11 = scmp.ne.s32.totalorder %s29_s27, %s247_s8  ;;  %p253_p13 = scmp.lt.s32.totalorder %s247_s8, %s247_s8 }
  0x1d   :  { %p254_p0 = por %p253_p13, %p252_p12 }
  0x1f   :  { %p255_p1 = pnand %p254_p0, %p248_p11 }
  0x21   :  { %258 = shalt.err (!%p255_p1)
}
  0x22   :  { %34 = dma.hbm_to_vmem [thread:$0]  %s363_s1, 1024, %s29_s27, [#allocation6], %s288_s22, %s288_s22, %s289_s23  }
  0x23   :  { %281 = dma.done.wait [#allocation3], 256  }
  0x24   :  { %282 = vsyncadd [#allocation3], 4294967040 }
  0x25   :  { %283 = dma.done.wait [#allocation6], 1024  }
  0x26   :  { %284 = vsyncadd [#allocation6], 4294966272  ;;  %v45_v0 = vld [vmem:[#allocation5] sm:$0xff]  ;;  %v46_v1 = vld [vmem:[#allocation5 + $0x8] sm:$0xff]  ;;  %vm60_vm0 = vcmask 523264   ;;  %s291_s11 = smov [#allocation7]  }
  0x27   :  { %v47_v2 = vld [vmem:[#allocation5 + $0x10] sm:$0xff]  ;;  %v194_v3 = vpack.c.bf16 %v46_v1, %v45_v0  ;;  %v48_v4 = vld [vmem:[#allocation5 + $0x18] sm:$0xff]  ;;  %v49_v6 = vld [vmem:[#allocation5 + $0x20] sm:$0xff]  ;;  %s149_s12 = sshll.u32 %s291_s11, 4  ;;  %s150_s12 = int_to_ptr.vmem [resolvable:$true] %s149_s12 }
  0x28   :  { %v198_v5 = vpack.c.bf16 %v48_v4, %v47_v2  ;;  %v50_v7 = vld [vmem:[#allocation5 + $0x28] sm:$0xff]  ;;  %v43_v8 = vld [vmem:[#allocation2] sm:$0xff]  ;;  %v52_v11 = vld [vmem:[#allocation5 + $0x38] sm:$0xff]  ;;  %s259_s13 = scalar_lea.vmem %s150_s12, 256  ;;  %p264_p3 = scmp.lt.s32.totalorder %s150_s12, %s150_s12 }
  0x29   :  { %195 = vmatprep.subr.bf16.mxu0 %v194_v3  ;;  %191 = vmatprep.mubr.msk.f32.mxu0 %vm60_vm0, %v43_v8  ;;  %v202_v9 = vpack.c.bf16 %v50_v7, %v49_v6  ;;  %v51_v10 = vld [vmem:[#allocation5 + $0x30] sm:$0xff]  ;;  %v44_v13 = vld [vmem:[#allocation2 + $0x8] sm:$0xff]  ;;  %p260_p2 = scmp.ne.s32.totalorder %s150_s12, %s259_s13  ;;  %p265_p4 = scmp.lt.s32.totalorder %s259_s13, %s259_s13 }
  0x2a   :  { %197 = vmatpush3.bf16.msra.mxu0 %v194_v3  ;;  %v206_v12 = vpack.c.bf16 %v52_v11, %v51_v10  ;;  %v162_v14 = vld [vmem:[%s364_s2] ss:$0 sm:$0xff] }
  0x2b   :  { %199 = vmatprep.subr.bf16.mxu0 %v198_v5  ;;  %p266_p5 = por %p265_p4, %p264_p3 }
  0x2d   :  { %p267_p6 = pnand %p266_p5, %p260_p2 }
  0x2e   :  { %201 = vmatpush3.bf16.msra.mxu0 %v198_v5 }
  0x2f   :  { %203 = vmatprep.subr.bf16.mxu0 %v202_v9 }
  0x32   :  { %205 = vmatpush3.bf16.msra.mxu0 %v202_v9 }
  0x33   :  { %207 = vmatprep.subr.bf16.mxu0 %v206_v12 }
  0x36   :  { %209 = vmatpush3.bf16.msra.mxu0 %v206_v12 }
  0x39   :  { %192 = vmatmul.mubr.msk.f32.vlgmr.msra.gmra.mrb[0].mxu0 %vm60_vm0, %v44_v13 }
 0x10c   :  { %v193_v15 = vpop.f32.mrb[0].mxu0 }
 0x10d   :  { %v139_v16 = vadd.f32 %v193_v15, %v162_v14  ;;  %v133_v17 = vpop.f32.mrb[1].mxu0 }
 0x10e   :  { %v134_v18 = vadd.f32 %v162_v14, %v133_v17 }
 0x10f   :  { %143 = vst [vmem:[#allocation7 + $0x8] sm:$0xff] %v139_v16 }
 0x110   :  { %142 = vst [vmem:[#allocation7] sm:$0xff] %v134_v18 }
 0x111   :  { %270 = shalt.err (!%p267_p6)
}
 0x112   :  { %s271_s2 = scalar_lea.hbm %s365_s3, 256 }
 0x113   :  { %p272_p7 = scmp.ne.s32.totalorder %s365_s3, %s271_s2  ;;  %p275_p8 = scmp.lt.u32.totalorder %s271_s2, %s365_s3 }
 0x115   :  { %p277_p9 = pnand %p275_p8, %p272_p7 }
 0x117   :  { %280 = shalt.err (!%p277_p9)
}
 0x118   :  { %155 = dma.vmem_to_hbm [thread:$0]  %s150_s12, 256, %s365_s3, [#allocation4], %s288_s22, %s288_s22, %s289_s23  }
 0x119   :  { %285 = dma.done.wait [#allocation4], 256  }
 0x11a   :  { %286 = vsyncadd [#allocation4], 4294967040 }
 0x11b   :  { %159 = vsyncpa [#allocation3], 1 }
 0x11c   :  { %160 = vsyncpa [#allocation6], 1 }
 0x11d   :  { %161 = vsyncpa [#allocation4], 1 }

</bundles_post_ra>
